<compile_context>
chip_gen: v6e
topology: v6e:2x2x1
jax: 0.10.0
libtpu: 0.0.40
codegen_flags: <defaults>
</compile_context>

<pallas_src>
import functools

import jax
import jax.numpy as jnp
from jax.experimental import pallas as pl
from jax.experimental.pallas import tpu as pltpu


# ---------------------------------------------------------------------------
# Chip-aware budgets (v5e/v6e: 128 MiB VMEM, 1 TC; v7x: 64 MiB VMEM, 2 TCs).
# ---------------------------------------------------------------------------
def _tpu_vmem_and_cores():
    vmem = 64 * 1024 * 1024        # conservative default (v7x physical VMEM)
    cores = 1
    try:
        info = pltpu.get_tpu_info()
        v = getattr(info, "vmem_capacity_bytes", None)
        if isinstance(v, int) and v > 0:
            vmem = v
        for attr in ("num_tensorcores", "tensorcore_count", "num_cores",
                     "core_count", "cores_per_chip"):
            c = getattr(info, attr, None)
            if isinstance(c, int) and c > 0:
                cores = c
                break
    except Exception:
        pass
    try:
        kind = jax.devices()[0].device_kind.lower()
        if "7" in kind:            # v7x family: 2 TensorCores per chip
            cores = max(cores, 2)
    except Exception:
        pass
    return vmem, cores


# ---------------------------------------------------------------------------
# Fused kernel: projection -> scores -> softmax -> weighted context.
# Specialized at trace time on (has_mask, return_weights, seq_first_out) so
# unused inputs / outputs are never DMA'd or computed.
# ---------------------------------------------------------------------------
def _make_fused_kernel(has_mask, return_weights, seq_first_out):
    def kernel(*refs):
        i = 0
        q_ref = refs[i]; i += 1          # (Bt, Lq, H)
        ctx_ref = refs[i]; i += 1        # (Bt, Lc, C)
        wt_ref = refs[i]; i += 1         # (C, H)   weight^T, VMEM-resident
        b_ref = refs[i]; i += 1          # (1, H)   float32, VMEM-resident
        mask_ref = None
        if has_mask:
            mask_ref = refs[i]; i += 1   # (Bt, 1, Lc) float32
        c_ref = refs[i]; i += 1          # (Lq, Bt*C) | (Lq, Bt, C) | (Bt, Lq, C)
        w_ref = refs[i] if return_weights else None   # (Bt, Lq, Lc)

        q = q_ref[...]                   # (Bt, Lq, H)
        ctx = ctx_ref[...]               # (Bt, Lc, C)
        bt, lc, cdim = ctx.shape
        lq = q.shape[1]
        hdim = q.shape[2]

        # --- fused projection: e = ctx @ W^T + b   (one MXU matmul, f32 acc) -
        ctx2 = ctx.reshape(bt * lc, cdim)
        e2 = jnp.dot(ctx2, wt_ref[...], preferred_element_type=jnp.float32)
        e = (e2 + b_ref[...]).reshape(bt, lc, hdim).astype(q.dtype)

        # --- scores[b,q,l] = sum_h q[b,q,h] * e[b,l,h]  (no in-kernel .T) ----
        scores = jnp.einsum("bqh,blh->bql", q, e,
                            preferred_element_type=jnp.float32)
        if has_mask:
            scores = scores + mask_ref[...]     # (Bt,1,Lc) broadcast over rows

        # --- softmax over Lc in f32 ------------------------------------------
        m = jnp.max(scores, axis=-1, keepdims=True)
        p = jnp.exp(scores - m)
        denom = jnp.sum(p, axis=-1, keepdims=True)
        if return_weights:
            attn = p / denom                               # exact normalization
        else:
            attn = p * pl.reciprocal(denom, approx=True)   # EUP slot: ~free

        # --- c[b,q,c] = sum_l attn[b,q,l] * ctx[b,l,c] ------------------------
        c = jnp.einsum("bql,blc->bqc", attn.astype(ctx.dtype), ctx,
                       preferred_element_type=jnp.float32)

        if seq_first_out:
            c = jnp.transpose(c, (1, 0, 2))    # (Lq, Bt, C), rides the XLU
        c_ref[...] = c.reshape(c_ref.shape).astype(c_ref.dtype)

        if return_weights:
            w_ref[...] = attn.astype(w_ref.dtype)

    return kernel


# ---------------------------------------------------------------------------
# Wrapper
# ---------------------------------------------------------------------------
def luong_attention(query, context, weight, bias, inf_mask=None,
                    requires_weight=False, compute_dtype=jnp.float32,
                    batch_tile=None):
    """Pallas forward pass of LuongAttention.

    query:    (Lq, B, H)  seq-first
    context:  (Lc, B, C)  seq-first
    weight:   (H, C)      nn.Linear(C, H).weight layout
    bias:     (H,)
    inf_mask: optional (B, Lc) additive mask
    Returns c: (Lq, B, C) and, if requires_weight, attention weights (B, Lq, Lc).
    """
    Lq, B, H = query.shape
    Lc, Bc, C = context.shape
    assert B == Bc
    out_dtype = query.dtype
    has_mask = inf_mask is not None

    # --- generation-aware VMEM / core budgets --------------------------------
    vmem_cap, num_tc = _tpu_vmem_and_cores()
    vmem_limit = int(vmem_cap * 3 // 4)          # 96 MiB on v5e/v6e, 48 MiB v7x
    step_budget = vmem_limit // 2                # headroom for pipeline buffers

    itm = jnp.dtype(compute_dtype).itemsize
    out_itm = jnp.dtype(out_dtype).itemsize
    per_batch = (2 * (Lq * H * itm + Lc * C * itm          # double-buffered I/O
                      + (Lc * 4 if has_mask else 0)
                      + Lq * C * out_itm
                      + (Lq * Lc * out_itm if requires_weight else 0))
                 + 4 * (Lc * H + 3 * Lq * Lc + Lq * C + Lq * H))   # f32 temps
    fixed = 2 * (C * H * itm + H * 4)            # resident weight + bias

    if batch_tile is None:
        cap = max(1, (step_budget - fixed) // max(per_batch, 1))
        batch_tile = min(B, cap)
        while B % batch_tile != 0:               # divisor of B -> no padding
            batch_tile -= 1
        if num_tc > 1 and B // batch_tile < num_tc and batch_tile > 1:
            # Only force >= num_tc grid steps on multi-TC chips (v7x megacore).
            batch_tile = max(1, B // min(num_tc, B))
            while B % batch_tile != 0:
                batch_tile -= 1
        # TODO(synk): on v7x with B == 1, parallelize over Lq instead so the
        #             second TensorCore is not idle.
    batch_tile = max(1, min(int(batch_tile), B))
    num_tiles = pl.cdiv(B, batch_tile)
    B_pad = num_tiles * batch_tile

    # --- glue: seq-first -> batch-major, cast fused with the transpose -------
    q_bm = jnp.transpose(query, (1, 0, 2)).astype(compute_dtype)      # (B,Lq,H)
    ctx_bm = jnp.transpose(context, (1, 0, 2)).astype(compute_dtype)  # (B,Lc,C)
    wt = jnp.transpose(weight, (1, 0)).astype(compute_dtype)          # (C,H)
    bias2d = bias.reshape(1, H).astype(jnp.float32)
    if has_mask:
        mask_bm = inf_mask.reshape(B, 1, Lc).astype(jnp.float32)

    if B_pad != B:   # only reachable with a manual, non-divisor batch_tile
        pad = B_pad - B
        q_bm = jnp.pad(q_bm, ((0, pad), (0, 0), (0, 0)))
        ctx_bm = jnp.pad(ctx_bm, ((0, pad), (0, 0), (0, 0)))
        if has_mask:
            mask_bm = jnp.pad(mask_bm, ((0, pad), (0, 0), (0, 0)))

    # --- output layout selection ---------------------------------------------
    # Preferred: lane-dense, seq-first (Lq, B*C) slab written directly by the
    # kernel (no XLA transpose pass, unmasked vst).  Falls back to batch-major
    # + wrapper transpose when the block constraint cannot be met.
    seq_first_out = (num_tiles == 1) or ((batch_tile * C) % 128 == 0)

    in_specs = [
        pl.BlockSpec((batch_tile, Lq, H), lambda b: (b, 0, 0)),
        pl.BlockSpec((batch_tile, Lc, C), lambda b: (b, 0, 0)),
        pl.BlockSpec((C, H), lambda b: (0, 0)),        # weight: VMEM-resident
        pl.BlockSpec((1, H), lambda b: (0, 0)),        # bias:   VMEM-resident
    ]
    inputs = [q_bm, ctx_bm, wt, bias2d]
    if has_mask:
        in_specs.append(pl.BlockSpec((batch_tile, 1, Lc), lambda b: (b, 0, 0)))
        inputs.append(mask_bm)

    if seq_first_out:
        out_specs = [pl.BlockSpec((Lq, batch_tile * C), lambda b: (0, b))]
        out_shape = [jax.ShapeDtypeStruct((Lq, B_pad * C), out_dtype)]
    else:
        out_specs = [pl.BlockSpec((batch_tile, Lq, C), lambda b: (b, 0, 0))]
        out_shape = [jax.ShapeDtypeStruct((B_pad, Lq, C), out_dtype)]
    if requires_weight:
        # TODO(synk): pad Lc to a multiple of 128 for lane-dense weight stores
        #             at production sequence lengths.
        out_specs.append(pl.BlockSpec((batch_tile, Lq, Lc), lambda b: (b, 0, 0)))
        out_shape.append(jax.ShapeDtypeStruct((B_pad, Lq, Lc), out_dtype))

    kernel = _make_fused_kernel(has_mask, requires_weight, seq_first_out)

    results = pl.pallas_call(
        kernel,
        out_shape=tuple(out_shape),
        grid_spec=pltpu.PrefetchScalarGridSpec(
            num_scalar_prefetch=0,
            grid=(num_tiles,),
            in_specs=in_specs,
            out_specs=tuple(out_specs),
        ),
        compiler_params=pltpu.CompilerParams(
            dimension_semantics=("parallel",),
            vmem_limit_bytes=vmem_limit),
    )(*inputs)

    c_raw = results[0]
    if seq_first_out:
        c_sf = c_raw.reshape(Lq, B_pad, C)          # metadata-only reshape
        if B_pad != B:
            c_sf = c_sf[:, :B, :]
    else:
        c_sf = jnp.transpose(c_raw[:B], (1, 0, 2))  # batch-major -> seq-first

    if requires_weight:
        return c_sf, results[1][:B]
    return c_sf


def xavier_uniform(key, shape, gain=1.0):
    fan_out, fan_in = shape
    bound = gain * jnp.sqrt(6.0 / (fan_in + fan_out))
    return jax.random.uniform(key, shape, minval=-bound, maxval=bound,
                              dtype=jnp.float32)


if __name__ == "__main__":
    # Small shapes: batch=4, seq_q=8, seq_ctx=8, hidden=32, context_size=32.
    B, Lq, Lc, H, C = 4, 8, 8, 32, 32

    key = jax.random.PRNGKey(0)
    k_q, k_ctx, k_w, k_m = jax.random.split(key, 4)

    query = jax.random.normal(k_q, (Lq, B, H), dtype=jnp.float32)
    context = jax.random.normal(k_ctx, (Lc, B, C), dtype=jnp.float32)

    # nn.Linear(C, H) with xavier_uniform weight / zero bias.
    attn_weight = xavier_uniform(k_w, (H, C), gain=1.0)    # (out=H, in=C)
    attn_bias = jnp.zeros((H,), dtype=jnp.float32)
    inf_mask = jnp.where(jax.random.uniform(k_m, (B, Lc)) > 0.8, -1e9, 0.0)

    # Pure-JAX reference.
    q_bm = jnp.transpose(query, (1, 0, 2))
    ctx_bm = jnp.transpose(context, (1, 0, 2))
    e_ref = jnp.einsum("blc,hc->blh", ctx_bm, attn_weight) + attn_bias
    s_ref = jnp.einsum("bqh,blh->bql", q_bm, e_ref)
    w_ref = jax.nn.softmax(s_ref + inf_mask[:, None, :], axis=-1)
    c_ref = jnp.transpose(jnp.einsum("bql,blc->bqc", w_ref, ctx_bm), (1, 0, 2))
    w_ref_nm = jax.nn.softmax(s_ref, axis=-1)
    c_ref_nm = jnp.transpose(jnp.einsum("bql,blc->bqc", w_ref_nm, ctx_bm),
                             (1, 0, 2))

    # 1) f32 path, masked, with attention weights returned (exact softmax).
    attn_f32 = jax.jit(functools.partial(luong_attention, requires_weight=True))
    c_out, w_out = attn_f32(query, context, attn_weight, attn_bias, inf_mask)
    jax.block_until_ready((c_out, w_out))
    assert c_out.shape == (Lq, B, C) and w_out.shape == (B, Lq, Lc)
    assert jnp.allclose(c_out, c_ref, atol=1e-2, rtol=1e-2)
    assert jnp.allclose(w_out, w_ref, atol=1e-2, rtol=1e-2)

    # 2) bf16 MXU-input path, unmasked, context vector only: exercises the
    #    no-mask / no-attn-output kernel variant with approx reciprocal.
    attn_bf16 = jax.jit(functools.partial(luong_attention,
                                          requires_weight=False,
                                          compute_dtype=jnp.bfloat16))
    c_bf16 = attn_bf16(query, context, attn_weight, attn_bias)
    jax.block_until_ready(c_bf16)
    assert c_bf16.shape == (Lq, B, C)
    assert jnp.allclose(c_bf16, c_ref_nm, atol=1e-1, rtol=1e-1)

    # 3) multi-tile path (batch_tile=2 -> 2 grid steps, batch-major fallback
    #    output + wrapper transpose), masked, no weights.
    attn_tiled = jax.jit(functools.partial(luong_attention,
                                           requires_weight=False,
                                           batch_tile=2))
    c_tiled = attn_tiled(query, context, attn_weight, attn_bias, inf_mask)
    jax.block_until_ready(c_tiled)
    assert c_tiled.shape == (Lq, B, C)
    assert jnp.allclose(c_tiled, c_ref, atol=1e-2, rtol=1e-2)

    print("KERNEL_OK")
</pallas_src>

<mosaic_0001>
module attributes {stable_mosaic.version = 11 : i64} {
  func.func @kernel(%arg0: i32, %arg1: memref<4x8x32xf32, #tpu.memory_space<vmem>>, %arg2: memref<4x8x32xf32, #tpu.memory_space<vmem>>, %arg3: memref<32x32xf32, #tpu.memory_space<vmem>>, %arg4: memref<1x32xf32, #tpu.memory_space<vmem>>, %arg5: memref<4x1x8xf32, #tpu.memory_space<vmem>>, %arg6: memref<8x128xf32, #tpu.memory_space<vmem>>, %arg7: memref<4x8x8xf32, #tpu.memory_space<vmem>>) attributes {dimension_semantics = [#tpu.dimension_semantics<parallel>], iteration_bounds = array<i64: 1>, scalar_prefetch = 0 : i64, scratch_operands = 0 : i64, tpu.core_type = #tpu.core_type<tc>, window_params = [{transform_indices = @transform_0, window_bounds = array<i64: 4, 8, 32>}, {transform_indices = @transform_1, window_bounds = array<i64: 4, 8, 32>}, {pipeline_mode = #tpu.pipeline_mode<synchronous>, transform_indices = @transform_2, window_bounds = array<i64: 32, 32>}, {pipeline_mode = #tpu.pipeline_mode<synchronous>, transform_indices = @transform_3, window_bounds = array<i64: 1, 32>}, {transform_indices = @transform_4, window_bounds = array<i64: 4, 1, 8>}, {transform_indices = @transform_5, window_bounds = array<i64: 8, 128>}, {transform_indices = @transform_6, window_bounds = array<i64: 4, 8, 8>}]} {
    %c0 = arith.constant 0 : index
    %c0_0 = arith.constant 0 : index
    %c0_1 = arith.constant 0 : index
    %0 = vector.load %arg1[%c0, %c0_0, %c0_1] : memref<4x8x32xf32, #tpu.memory_space<vmem>>, vector<4x8x32xf32>
    %c0_2 = arith.constant 0 : index
    %c0_3 = arith.constant 0 : index
    %c0_4 = arith.constant 0 : index
    %1 = vector.load %arg2[%c0_2, %c0_3, %c0_4] : memref<4x8x32xf32, #tpu.memory_space<vmem>>, vector<4x8x32xf32>
    %2 = vector.shape_cast %1 : vector<4x8x32xf32> to vector<32x32xf32>
    %c0_5 = arith.constant 0 : index
    %c0_6 = arith.constant 0 : index
    %3 = vector.load %arg3[%c0_5, %c0_6] : memref<32x32xf32, #tpu.memory_space<vmem>>, vector<32x32xf32>
    %cst = arith.constant dense<0.000000e+00> : vector<32x32xf32>
    %4 = tpu.matmul %2, %3, %cst {dimension_numbers = #tpu.dot_dimension_numbers<[1], [0], [0], [1], [0, 0, 1, 1], [], []>} : vector<32x32xf32>, vector<32x32xf32>, vector<32x32xf32> -> vector<32x32xf32>
    %c0_7 = arith.constant 0 : index
    %c0_8 = arith.constant 0 : index
    %5 = vector.load %arg4[%c0_7, %c0_8] : memref<1x32xf32, #tpu.memory_space<vmem>>, vector<1x32xf32>
    %6 = vector.broadcast %5 : vector<1x32xf32> to vector<32x32xf32>
    %7 = arith.addf %4, %6 : vector<32x32xf32>
    %8 = vector.shape_cast %7 : vector<32x32xf32> to vector<4x8x32xf32>
    "tpu.trace_start"() <{level = 10 : i32, message = "bqh,blh->bql"}> : () -> ()
    %cst_9 = arith.constant dense<0.000000e+00> : vector<4x8x8xf32>
    %9 = tpu.matmul %0, %8, %cst_9 {dimension_numbers = #tpu.dot_dimension_numbers<[2], [2], [1], [1], [0, 0, 0, 1, 1, 1], [0], [0]>} : vector<4x8x32xf32>, vector<4x8x32xf32>, vector<4x8x8xf32> -> vector<4x8x8xf32>
    "tpu.trace_stop"() : () -> ()
    %c0_10 = arith.constant 0 : index
    %c0_11 = arith.constant 0 : index
    %c0_12 = arith.constant 0 : index
    %10 = vector.load %arg5[%c0_10, %c0_11, %c0_12] : memref<4x1x8xf32, #tpu.memory_space<vmem>>, vector<4x1x8xf32>
    %11 = vector.broadcast %10 : vector<4x1x8xf32> to vector<4x8x8xf32>
    %12 = arith.addf %9, %11 : vector<4x8x8xf32>
    %cst_13 = arith.constant dense<0xFF800000> : vector<4x8xf32>
    %13 = vector.multi_reduction <maximumf>, %12, %cst_13 [2] : vector<4x8x8xf32> to vector<4x8xf32>
    %14 = vector.shape_cast %13 : vector<4x8xf32> to vector<4x8x1xf32>
    %15 = vector.broadcast %14 : vector<4x8x1xf32> to vector<4x8x8xf32>
    %16 = arith.subf %12, %15 : vector<4x8x8xf32>
    %17 = math.exp %16 : vector<4x8x8xf32>
    %cst_14 = arith.constant dense<0.000000e+00> : vector<4x8xf32>
    %18 = vector.multi_reduction <add>, %17, %cst_14 [2] : vector<4x8x8xf32> to vector<4x8xf32>
    %19 = vector.shape_cast %18 : vector<4x8xf32> to vector<4x8x1xf32>
    %20 = vector.broadcast %19 : vector<4x8x1xf32> to vector<4x8x8xf32>
    %21 = arith.divf %17, %20 : vector<4x8x8xf32>
    "tpu.trace_start"() <{level = 10 : i32, message = "bql,blc->bqc"}> : () -> ()
    %cst_15 = arith.constant dense<0.000000e+00> : vector<4x8x32xf32>
    %22 = tpu.matmul %21, %1, %cst_15 {dimension_numbers = #tpu.dot_dimension_numbers<[2], [1], [1], [2], [0, 0, 0, 1, 1, 2], [0], [0]>} : vector<4x8x8xf32>, vector<4x8x32xf32>, vector<4x8x32xf32> -> vector<4x8x32xf32>
    "tpu.trace_stop"() : () -> ()
    %23 = tpu.transpose %22, [1, 0, 2] : vector<4x8x32xf32> -> vector<8x4x32xf32>
    %24 = vector.shape_cast %23 : vector<8x4x32xf32> to vector<8x128xf32>
    %c0_16 = arith.constant 0 : index
    %c0_17 = arith.constant 0 : index
    %25 = vector.load %arg6[%c0_16, %c0_17] : memref<8x128xf32, #tpu.memory_space<vmem>>, vector<8x128xf32>
    tpu.vector_store %arg6[%c0_16, %c0_17], %24 {strides = array<i32>} : memref<8x128xf32, #tpu.memory_space<vmem>>, vector<8x128xf32>,
    %c0_18 = arith.constant 0 : index
    %c0_19 = arith.constant 0 : index
    %c0_20 = arith.constant 0 : index
    %26 = vector.load %arg7[%c0_18, %c0_19, %c0_20] : memref<4x8x8xf32, #tpu.memory_space<vmem>>, vector<4x8x8xf32>
    tpu.vector_store %arg7[%c0_18, %c0_19, %c0_20], %21 {strides = array<i32>} : memref<4x8x8xf32, #tpu.memory_space<vmem>>, vector<4x8x8xf32>,
    return
  }
  func.func @transform_0(%arg0: i32) -> (i32, i32, i32) {
    %c0_i32 = arith.constant 0 : i32
    %c0_i32_0 = arith.constant 0 : i32
    %c0_i32_1 = arith.constant 0 : i32
    return %arg0, %c0_i32, %c0_i32_0 : i32, i32, i32
  }
  func.func @transform_1(%arg0: i32) -> (i32, i32, i32) {
    %c0_i32 = arith.constant 0 : i32
    %c0_i32_0 = arith.constant 0 : i32
    %c0_i32_1 = arith.constant 0 : i32
    return %arg0, %c0_i32, %c0_i32_0 : i32, i32, i32
  }
  func.func @transform_2(%arg0: i32) -> (i32, i32) {
    %c0_i32 = arith.constant 0 : i32
    %c0_i32_0 = arith.constant 0 : i32
    %c0_i32_1 = arith.constant 0 : i32
    return %c0_i32, %c0_i32_0 : i32, i32
  }
  func.func @transform_3(%arg0: i32) -> (i32, i32) {
    %c0_i32 = arith.constant 0 : i32
    %c0_i32_0 = arith.constant 0 : i32
    %c0_i32_1 = arith.constant 0 : i32
    return %c0_i32, %c0_i32_0 : i32, i32
  }
  func.func @transform_4(%arg0: i32) -> (i32, i32, i32) {
    %c0_i32 = arith.constant 0 : i32
    %c0_i32_0 = arith.constant 0 : i32
    %c0_i32_1 = arith.constant 0 : i32
    return %arg0, %c0_i32, %c0_i32_0 : i32, i32, i32
  }
  func.func @transform_5(%arg0: i32) -> (i32, i32) {
    %c0_i32 = arith.constant 0 : i32
    %c0_i32_0 = arith.constant 0 : i32
    return %c0_i32, %arg0 : i32, i32
  }
  func.func @transform_6(%arg0: i32) -> (i32, i32, i32) {
    %c0_i32 = arith.constant 0 : i32
    %c0_i32_0 = arith.constant 0 : i32
    %c0_i32_1 = arith.constant 0 : i32
    return %arg0, %c0_i32, %c0_i32_0 : i32, i32, i32
  }
}

</mosaic_0001>

<bundles_post_ra>
// kernel: luong_attention.1
= control target key start
LH: loop header
LB: loop body
LE: loop exit
PB: predicated region body
PF: predicated region fallthrough
CT: control target
= control target key end

     0   :  { %vm42_vm0 = vcmask 261120   ;;  %s1299_s0 = inlined_call_operand.vmem [shape: f32[4,8,32], index: 0, kind: input, shape index: {}]   ;;  %s1300_s1 = inlined_call_operand.vmem [shape: f32[4,8,32], index: 1, kind: input, shape index: {}]   ;;  %s1301_s2 = inlined_call_operand.vmem [shape: f32[32,32], index: 2, kind: input, shape index: {}]   ;;  %s1302_s3 = inlined_call_operand.vmem [shape: f32[1,32], index: 3, kind: input, shape index: {}]   ;;  %s1303_s4 = inlined_call_operand.vmem [shape: f32[4,1,8], index: 4, kind: input, shape index: {}]   ;;  %s1304_s5 = inlined_call_operand.vmem [shape: f32[8,128], index: 5, kind: output, shape index: {0}]   ;;  %s1305_s6 = inlined_call_operand.hbm [shape: f32[4,8,8], index: 6, kind: output, shape index: {1}]  }
   0x1   :  { %v34_v0 = vld [vmem:[%s1301_s2 + $0x18] sm:$0xff]  ;;  %v33_v1 = vld [vmem:[%s1301_s2 + $0x10] sm:$0xff]  ;;  %v27_v2 = vld [vmem:[%s1300_s1] sm:$0xff] }
   0x2   :  { %1034 = vmatprep.subr.mxu0 %v34_v0  ;;  %v32_v3 = vld [vmem:[%s1301_s2 + $0x8] sm:$0xff]  ;;  %1042 = vmatprep.mubr.msk.f32.mxu0 %vm42_vm0, %v27_v2 }
   0x3   :  { %1035 = vmatpush3.msra.mxu0 %v34_v0 }
   0x4   :  { %12 = vsyncpa [#allocation3], 0  ;;  %1036 = vmatprep.subr.mxu0 %v33_v1  ;;  %v31_v4 = vld [vmem:[%s1301_s2] sm:$0xff]  ;;  %v28_v5 = vld [vmem:[%s1300_s1 + $0x8] sm:$0xff]  ;;  %v1136_v8 = vmov 0.0   ;;  %vm1137_vm1 = vmmov 0  }
   0x5   :  { %1037 = vmatpush3.msra.mxu0 %v33_v1  ;;  %v1203_v6 = vld [vmem:[%s1300_s1 + $0x10] sm:$0xff]  ;;  %v1211_v7 = vld [vmem:[%s1300_s1 + $0x18] sm:$0xff]  ;;  %1048 = vmatprep.subr.mxu1 %v1136_v8  ;;  %v987_v10 = vld [vmem:[%s1302_s3] ss:$0 sm:$0xff]  ;;  %vm472_vm2 = vcmask 64512  }
   0x6   :  { %1038 = vmatprep.subr.mxu0 %v32_v3  ;;  %1050 = vmatprep.mubr.msk.f32.mxu1 %vm1137_vm1, %v1136_v8  ;;  %v23_v15 = vld [vmem:[%s1299_s0] sm:$0xff]  ;;  %v26_v17 = vld [vmem:[%s1299_s0 + $0x18] sm:$0xff]  ;;  %v24_v19 = vld [vmem:[%s1299_s0 + $0x8] sm:$0xff] }
   0x7   :  { %1039 = vmatpush3.msra.mxu0 %v32_v3  ;;  %v25_v21 = vld [vmem:[%s1299_s0 + $0x10] sm:$0xff]  ;;  %v992_v22 = vld [vmem:[%s1303_s4] ss:$0 sm:$0xff]  ;;  %v993_v26 = vld [vmem:[%s1303_s4 + $0x1] ss:$0 sm:$0xff] }
   0x8   :  { %1040 = vmatprep.subr.mxu0 %v31_v4  ;;  %v994_v33 = vld [vmem:[%s1303_s4 + $0x2] ss:$0 sm:$0xff]  ;;  %v995_v34 = vld [vmem:[%s1303_s4 + $0x3] ss:$0 sm:$0xff]  ;;  %s1140_s4 = smov [#allocation2]  }
   0x9   :  { %1041 = vmatpush3.msra.mxu0 %v31_v4  ;;  %s974_s27 = sshll.u32 %s1140_s4, 4  ;;  %s975_s27 = int_to_ptr.vmem [resolvable:$true] %s974_s27 }
   0xa   :  { %1043 = vmatmul.mubr.msk.f32.vlgmr.msra.gmra.mxu0 %vm42_vm0, %v28_v5  ;;  %1063 = vmatprep.subr.mxu0 %v1136_v8  ;;  %s1114_s28 = scalar_lea.vmem %s975_s27, 512  ;;  %p1119_p1 = scmp.lt.s32.totalorder %s975_s27, %s975_s27 }
   0xb   :  { %1045 = vmatprep.mubr.msk.f32.mxu0 %vm42_vm0, %v1203_v6  ;;  %p1115_p0 = scmp.ne.s32.totalorder %s975_s27, %s1114_s28  ;;  %p1120_p2 = scmp.lt.s32.totalorder %s1114_s28, %s1114_s28 }
   0xd   :  { %p1121_p3 = por %p1120_p2, %p1119_p1 }
   0xe   :  { %1046 = vmatmul.mubr.msk.f32.gmra.mxu0 %vm42_vm0, %v1211_v7 }
   0xf   :  { %1065 = vmatprep.mubr.msk.f32.mxu0 %vm1137_vm1, %v1136_v8  ;;  %p1122_p4 = pnand %p1121_p3, %p1115_p0 }
  0xca   :  { %v1044_v9 = vpop.f32.mrf.mxu0 }
  0xcb   :  { %v127_v16 = vadd.f32 %v1044_v9, %v987_v10 }
  0xcc   :  { %v121_v11 = vpop.f32.mrf.mxu0 }
  0xcd   :  { %v122_v12 = vadd.f32 %v987_v10, %v121_v11 }
  0xce   :  { %v1047_v13 = vpop.f32.mrf.mxu0 }
  0xcf   :  { %1049 = vmatpush3.xpose.msk.msra.mxu1 %vm42_vm0, %v122_v12  ;;  %v137_v14 = vadd.f32 %v1047_v13, %v987_v10 }
  0xd0   :  { %1053 = vmatprep.subr.mxu1 %v1136_v8  ;;  %v131_v18 = vpop.f32.mrf.mxu0 }
  0xd1   :  { %1064 = vmatpush3.xpose.msk.msra.mxu0 %vm42_vm0, %v137_v14  ;;  %v132_v20 = vadd.f32 %v987_v10, %v131_v18  ;;  %v1138_v14 = vmov 1983009808   ;;  %v1139_v18 = vmov 1934713408  }
  0xd2   :  { %1051 = vmatmul.mubr.msk.f32.vlgmr.msra.gmra.mxu1 %vm42_vm0, %v23_v15  ;;  %1073 = vmatprep.subr.mxu0 %v1136_v8  ;;  %v812_v15 = vunpack.c.l.s4 %v1138_v14 }
  0xd3   :  { %1054 = vmatpush3.xpose.msk.msra.mxu1 %vm42_vm0, %v127_v16  ;;  %1055 = vmatprep.mubr.msk.f32.mxu1 %vm1137_vm1, %v1136_v8  ;;  %v814_v16 = vlaneseq }
  0xd4   :  { %1058 = vmatprep.subr.mxu1 %v1136_v8  ;;  %1066 = vmatmul.mubr.msk.f32.vlgmr.msra.gmra.mxu0 %vm42_vm0, %v26_v17 }
  0xd5   :  { %1074 = vmatpush3.msra.mxu0 %v28_v5  ;;  %1075 = vmatprep.mubr.msk.f32.mxu0 %vm1137_vm1, %v1136_v8 }
  0xd6   :  { %1056 = vmatmul.mubr.msk.f32.vlgmr.msra.gmra.mxu1 %vm42_vm0, %v24_v19  ;;  %1083 = vmatprep.subr.mxu0 %v1136_v8  ;;  %v813_v19 = vunpack.c.0.s8 %v812_v15 }
  0xd7   :  { %1059 = vmatpush3.xpose.msk.msra.mxu1 %vm42_vm0, %v132_v20  ;;  %1060 = vmatprep.mubr.msk.f32.mxu1 %vm1137_vm1, %v1136_v8  ;;  %v815_v20 = vshrl.u32 %v814_v16, 7 }
  0xd8   :  { %1068 = vmatprep.subr.mxu1 %v1136_v8 }
  0xda   :  { %1061 = vmatmul.mubr.msk.f32.vlgmr.msra.gmra.mxu1 %vm42_vm0, %v25_v21 }
  0xdb   :  { %1069 = vmatpush3.msra.mxu1 %v27_v2  ;;  %1070 = vmatprep.mubr.msk.f32.mxu1 %vm1137_vm1, %v1136_v8 }
  0xdc   :  { %1078 = vmatprep.subr.mxu1 %v1136_v8 }
 0x192   :  { %v240_v23 = vpop.f32.mrf.mxu1 }
 0x193   :  { %v241_v24 = vadd.f32 %v992_v22, %v240_v23 }
 0x194   :  { %v1052_v25 = vpop.f32.mrf.mxu1  ;;  %v468_v27 = vpop.f32.mrf.mxu0 }
 0x195   :  { %v473_v28 = vsel %vm472_vm2, %v241_v24, -inf  ;;  %v469_v38 = vadd.f32 %v995_v34, %v468_v27 }
 0x196   :  { %474 = vmax.xlane.f32.xlu0 %v473_v28  ;;  %v316_v29 = vpop.f32.mrf.mxu1  ;;  %v1067_v30 = vpop.f32.mrf.mxu0 }
 0x197   :  { %v317_v31 = vadd.f32 %v993_v26, %v316_v29  ;;  %v482_v41 = vsel %vm472_vm2, %v469_v38, -inf  ;;  %v816_v26 = vsub.s32 %v813_v19, %v815_v20 }
 0x198   :  { %v1057_v32 = vpop.f32.mrf.mxu1 }
 0x199   :  { %v476_v35 = vsel %vm472_vm2, %v317_v31, -inf }
 0x19a   :  { %477 = vmax.xlane.f32.xlu0 %v476_v35  ;;  %v392_v36 = vpop.f32.mrf.mxu1 }
 0x19b   :  { %v393_v37 = vadd.f32 %v994_v33, %v392_v36 }
 0x19c   :  { %v1062_v39 = vpop.f32.mrf.mxu1 }
 0x19d   :  { %v479_v40 = vsel %vm472_vm2, %v393_v37, -inf }
 0x19e   :  { %480 = vmax.xlane.f32.xlu1 %v479_v40 }
 0x1a2   :  { %483 = vmax.xlane.f32.xlu1 %v482_v41 }
 0x21f   :  { %v475_v42 = vpop.xlane.xlu0 %474 }
 0x220   :  { %v485_v43 = vsub.f32 %v241_v24, %v475_v42 }
 0x222   :  { %v489_v44 = vmul.f32 1.442695, %v485_v43 }
 0x223   :  { %v478_v45 = vpop.xlane.xlu0 %477 }
 0x224   :  { %1098 = vpow2.f32 %v489_v44  ;;  %v486_v46 = vsub.f32 %v317_v31, %v478_v45 }
 0x226   :  { %v491_v47 = vmul.f32 1.442695, %v486_v46 }
 0x227   :  { %v481_v48 = vpop.xlane.xlu1 %480 }
 0x228   :  { %1100 = vpow2.f32 %v491_v47  ;;  %v487_v49 = vsub.f32 %v393_v37, %v481_v48 }
 0x22a   :  { %v493_v50 = vmul.f32 1.442695, %v487_v49 }
 0x22b   :  { %v484_v51 = vpop.xlane.xlu1 %483 }
 0x22c   :  { %1102 = vpow2.f32 %v493_v50  ;;  %v488_v52 = vsub.f32 %v469_v38, %v484_v51 }
 0x22e   :  { %v495_v53 = vmul.f32 1.442695, %v488_v52 }
 0x230   :  { %1104 = vpow2.f32 %v495_v53 }
 0x231   :  { %v1099_v54 = vpop.eup %1098 }
 0x232   :  { %v497_v55 = vsel %vm472_vm2, %v1099_v54, 0.0 }
 0x233   :  { %498 = vadd.xlane.f32.xlu0 %v497_v55 }
 0x235   :  { %v1101_v56 = vpop.eup %1100 }
 0x236   :  { %v500_v57 = vsel %vm472_vm2, %v1101_v56, 0.0 }
 0x237   :  { %501 = vadd.xlane.f32.xlu1 %v500_v57 }
 0x239   :  { %v1103_v58 = vpop.eup %1102 }
 0x23a   :  { %v503_v59 = vsel %vm472_vm2, %v1103_v58, 0.0 }
 0x23b   :  { %504 = vadd.xlane.f32.xlu0 %v503_v59 }
 0x23d   :  { %v1105_v60 = vpop.eup %1104 }
 0x23e   :  { %v506_v61 = vsel %vm472_vm2, %v1105_v60, 0.0 }
 0x23f   :  { %507 = vadd.xlane.f32.xlu1 %v506_v61 }
 0x2bc   :  { %v499_v62 = vpop.xlane.xlu0 %498 }
 0x2bd   :  { %1106 = vrcp.f32 %v499_v62 }
 0x2c0   :  { %v502_v63 = vpop.xlane.xlu1 %501 }
 0x2c1   :  { %1108 = vrcp.f32 %v502_v63 }
 0x2c4   :  { %v505_v0 = vpop.xlane.xlu0 %504 }
 0x2c5   :  { %1110 = vrcp.f32 %v505_v0 }
 0x2c8   :  { %v508_v1 = vpop.xlane.xlu1 %507 }
 0x2c9   :  { %1112 = vrcp.f32 %v508_v1 }
 0x2ca   :  { %v1107_v2 = vpop.eup %1106 }
 0x2cb   :  { %v510_v3 = vmul.f32 %v1107_v2, %v1099_v54 }
 0x2cd   :  { %1071 = vmatmul.mubr.msk.f32.vlgmr.msra.gmra.mxu1 %vm472_vm2, %v510_v3  ;;  %963 = vst.msk [vmem:[#allocation2] sm:$0xff] %vm472_vm2, %v510_v3 }
 0x2ce   :  { %v1109_v4 = vpop.eup %1108  ;;  %1079 = vmatpush3.msra.mxu1 %v1203_v6  ;;  %1080 = vmatprep.mubr.msk.f32.mxu1 %vm1137_vm1, %v1136_v8 }
 0x2cf   :  { %v512_v5 = vmul.f32 %v1109_v4, %v1101_v56 }
 0x2d1   :  { %1076 = vmatmul.mubr.msk.f32.vlgmr.msra.gmra.mxu0 %vm472_vm2, %v512_v5  ;;  %964 = vst.msk [vmem:[#allocation2 + $0x8] sm:$0xff] %vm472_vm2, %v512_v5 }
 0x2d2   :  { %v1111_v9 = vpop.eup %1110  ;;  %1084 = vmatpush3.msra.mxu0 %v1211_v7  ;;  %1085 = vmatprep.mubr.msk.f32.mxu0 %vm1137_vm1, %v1136_v8  ;;  %v844_v8 = vunpack.c.l.s4 %v1139_v18 }
 0x2d3   :  { %v514_v10 = vmul.f32 %v1111_v9, %v1103_v58 }
 0x2d4   :  { %v845_v23 = vunpack.c.0.s8 %v844_v8 }
 0x2d5   :  { %1081 = vmatmul.mubr.msk.f32.vlgmr.msra.gmra.mxu1 %vm472_vm2, %v514_v10  ;;  %965 = vst.msk [vmem:[#allocation2 + $0x10] sm:$0xff] %vm472_vm2, %v514_v10 }
 0x2d6   :  { %v1113_v6 = vpop.eup %1112  ;;  %v848_v30 = vsub.s32 %v845_v23, %v815_v20 }
 0x2d7   :  { %v516_v11 = vmul.f32 %v1113_v6, %v1105_v60 }
 0x2d9   :  { %1086 = vmatmul.mubr.msk.f32.vlgmr.msra.gmra.mxu0 %vm472_vm2, %v516_v11  ;;  %966 = vst.msk [vmem:[#allocation2 + $0x18] sm:$0xff] %vm472_vm2, %v516_v11 }
 0x38d   :  { %v586_v12 = vpop.f32.mrf.mxu1 }
 0x38f   :  { %v1072_v13 = vpop.f32.mrf.mxu1 }
 0x391   :  { %v659_v7 = vpop.f32.mrf.mxu0 }
 0x393   :  { %v1077_v17 = vpop.f32.mrf.mxu0 }
 0x395   :  { %v732_v21 = vpop.f32.mrf.mxu1 }
 0x396   :  { %v809_v24 = vcombine.low %v586_v12, %v732_v21  ;;  %v810_v25 = vcombine.high %v586_v12, %v732_v21 }
 0x397   :  { %v1082_v22 = vpop.f32.mrf.mxu1 }
 0x398   :  { %v817_v32 = vrot.slane %v809_v24, %v816_v26  ;;  %v824_v33 = vrot.slane %v810_v25, %v816_v26 }
 0x399   :  { %v805_v27 = vpop.f32.mrf.mxu0 }
 0x39a   :  { %v825_v28 = vcombine.low %v659_v7, %v805_v27  ;;  %v826_v29 = vcombine.high %v659_v7, %v805_v27 }
 0x39b   :  { %v1087_v31 = vpop.f32.mrf.mxu0 }
 0x39c   :  { %v833_v34 = vrot.slane %v825_v28, %v816_v26  ;;  %v840_v35 = vrot.slane %v826_v29, %v816_v26 }
 0x39e   :  { %v841_v36 = vcombine.low %v817_v32, %v833_v34  ;;  %v842_v37 = vcombine.high %v817_v32, %v833_v34  ;;  %v857_v38 = vcombine.low %v824_v33, %v840_v35  ;;  %v858_v39 = vcombine.high %v824_v33, %v840_v35 }
 0x3a0   :  { %v849_v40 = vrot.slane %v841_v36, %v848_v30  ;;  %v856_v41 = vrot.slane %v842_v37, %v848_v30  ;;  %v865_v42 = vrot.slane %v857_v38, %v848_v30  ;;  %v872_v43 = vrot.slane %v858_v39, %v848_v30 }
 0x3a2   :  { %v877_v44 = vcombine.low %v849_v40, %v856_v41  ;;  %v1008_v45 = vcombine.high %v849_v40, %v856_v41  ;;  %v893_v46 = vcombine.low %v865_v42, %v872_v43  ;;  %v1009_v47 = vcombine.high %v865_v42, %v872_v43 }
 0x3a4   :  { %v884_v48 = vrot.slane %v877_v44, %v816_v26  ;;  %v892_v49 = vrot.slane %v1008_v45, %v816_v26  ;;  %v900_v50 = vrot.slane %v893_v46, %v816_v26  ;;  %v908_v51 = vrot.slane %v1009_v47, %v816_v26 }
 0x3a5   :  { %1125 = shalt.err (!%p1122_p4)
}
 0x3a6   :  { %s1141_s29 = smov 128   ;;  %s1142_s30 = smov 8   ;;  %v910_v52 = vcombine.high %v884_v48, %v892_v49  ;;  %v926_v53 = vcombine.high %v900_v50, %v908_v51  ;;  %v909_v54 = vcombine.low %v884_v48, %v892_v49  ;;  %v925_v55 = vcombine.low %v900_v50, %v908_v51 }
 0x3a7   :  { %980 = dma.vmem_to_hbm [thread:$0]  %s975_s27, 512, %s1305_s6, [#allocation3], %s1141_s29, %s1141_s29, %s1142_s30   ;;  %vm958_vm3 = vcmask 523264   ;;  %vm960_vm4 = vcmask 785408  }
 0x3a8   :  { %v924_v56 = vrot.slane %v910_v52, %v848_v30  ;;  %v940_v57 = vrot.slane %v926_v53, %v848_v30  ;;  %v917_v58 = vrot.slane %v909_v54, %v848_v30  ;;  %v933_v59 = vrot.slane %v925_v55, %v848_v30  ;;  %s1143_s9 = smov 64   ;;  %s1144_s10 = smov 32  }
 0x3a9   :  { %s1145_s11 = smov 96  }
 0x3aa   :  { %v943_v60 = vcombine.low %v924_v56, %v940_v57  ;;  %v942_v61 = vcombine.high %v917_v58, %v933_v59  ;;  %v941_v62 = vcombine.low %v917_v58, %v933_v59  ;;  %v944_v63 = vcombine.high %v924_v56, %v940_v57 }
 0x3ac   :  { %950 = vrot.lane.b32.xlu1 %v943_v60, %s1143_s9  ;;  %946 = vrot.lane.b32.xlu0 %v942_v61, %s1144_s10 }
 0x3b0   :  { %954 = vrot.lane.b32.xlu1 %v944_v63, %s1145_s11 }
 0x41e   :  { %v951_v0 = vpop.permute.xlu1 %950  ;;  %v947_v1 = vpop.permute.xlu0 %946 }
 0x41f   :  { %v957_v2 = vsel %vm42_vm0, %v941_v62, %v947_v1 }
 0x420   :  { %v959_v4 = vsel %vm958_vm3, %v957_v2, %v951_v0 }
 0x422   :  { %v955_v3 = vpop.permute.xlu1 %954 }
 0x423   :  { %v961_v5 = vsel %vm960_vm4, %v959_v4, %v955_v3 }
 0x424   :  { %962 = vst [vmem:[%s1304_s5] sm:$0xff] %v961_v5 }
 0x425   :  { %1134 = dma.done.wait [#allocation3], 512  }
 0x426   :  { %1135 = vsyncadd [#allocation3], 4294966784 }
 0x427   :  { %986 = vsyncpa [#allocation3], 1 }

</bundles_post_ra>
